<compile_context>
chip_gen: v7x
topology: tpu7x:2x2x1
jax: 0.10.0
libtpu: 0.0.40
codegen_flags: <defaults>
</compile_context>

<pallas_src>
import jax
import jax.numpy as jnp
from jax import lax
from jax.experimental import pallas as pl
from jax.experimental.pallas import tpu as pltpu

LANE = 128
CHUNK_ROWS = 64            # 64x128 f32 chunk = 8 vregs/stream -> bce lives in vregs only
MAX_BLOCK_ROWS = 8192      # 8192x128 f32 = 4 MiB per stream per buffer
NUM_SLICES = 2             # leading "parallel" grid axis (2 TensorCores on v7x)
VMEM_LIMIT_BYTES = 32 * 1024 * 1024


def _round_up(a: int, m: int) -> int:
    return ((a + m - 1) // m) * m


def _make_kernel(block_rows: int, chunk_rows: int, bps: int,
                 need_mask: bool, full_rows: int, rem: int, hard_labels: bool):
    """Build the kernel with all sizing/masking parameters baked in at trace time."""
    num_chunks = block_rows // chunk_rows

    def kernel(x_ref, t_ref, acc_ref):
        j = pl.program_id(1)

        @pl.when(j == 0)
        def _():
            acc_ref[...] = jnp.zeros_like(acc_ref)

        # Un-clamped global first row of this grid step (used only for masking).
        row0 = (pl.program_id(0) * bps + j) * block_rows

        def chunk_sum(c, acc):
            r = pl.multiple_of(c * chunk_rows, chunk_rows)
            x = x_ref[pl.ds(r, chunk_rows), :].astype(jnp.float32)
            t = t_ref[pl.ds(r, chunk_rows), :].astype(jnp.float32)

            if hard_labels:
                # Single EUP log; exact only for hard 0/1 labels (gated).
                p = jnp.where(t >= 0.5, x, 1.0 - x)
                bce = -jnp.maximum(jnp.log(p), jnp.float32(-100.0))
            else:
                # Match torch.nn.functional.binary_cross_entropy (logs clamped at -100).
                log_x = jnp.maximum(jnp.log(x), jnp.float32(-100.0))
                log_1mx = jnp.maximum(jnp.log(1.0 - x), jnp.float32(-100.0))
                bce = -(t * log_x + (1.0 - t) * log_1mx)

            if need_mask:
                # Element-accurate validity mask against the true element count.
                # jnp.where is a select, so garbage/NaN in invalid lanes never propagates.
                row_g = row0 + r + lax.broadcasted_iota(jnp.int32, (chunk_rows, LANE), 0)
                valid = row_g < full_rows
                if rem:
                    lane = lax.broadcasted_iota(jnp.int32, (chunk_rows, LANE), 1)
                    valid = valid | ((row_g == full_rows) & (lane < rem))
                bce = jnp.where(valid, bce, jnp.float32(0.0))

            # (chunk,128) -> (chunk/8, 8, 128): vreg-aligned relabel, then VPU adds only.
            return acc + jnp.sum(bce.reshape(chunk_rows // 8, 8, LANE), axis=0)

        acc = lax.fori_loop(0, num_chunks, chunk_sum,
                            jnp.zeros((8, LANE), jnp.float32),
                            unroll=min(4, num_chunks))
        acc_ref[...] += acc

    return kernel


def focal_loss(inputs: jax.Array, targets: jax.Array,
               alpha: float = 0.8, gamma: float = 2.0,
               hard_labels: bool = False) -> jax.Array:
    """Focal loss matching the PyTorch FocalLoss.forward semantics."""
    assert inputs.shape == targets.shape
    n = int(inputs.size)
    x = inputs.reshape(-1)
    t = targets.reshape(-1)

    # Pad (one full-array copy) only when the flat size isn't a multiple of 128*8;
    # typical dense tensors need no pad.  Pad elements are masked inside the kernel,
    # so the pad value is irrelevant for correctness (1.0 keeps the math finite too).
    aligned_n = _round_up(n, LANE * 8)
    if aligned_n != n:
        pad = aligned_n - n
        x = jnp.pad(x, (0, pad), constant_values=1)
        t = jnp.pad(t, (0, pad), constant_values=1)

    rows = aligned_n // LANE   # multiple of 8

    # Block sizing: as big as VMEM comfortably allows, either a multiple of CHUNK_ROWS
    # (=> multiple of 32, satisfying every dtype's sublane rule for both arrays) or the
    # full row count (always legal), and never larger than the array.
    block_rows = min(MAX_BLOCK_ROWS,
                     _round_up(pl.cdiv(rows, NUM_SLICES), CHUNK_ROWS),
                     rows)
    total_blocks = pl.cdiv(rows, block_rows)
    num_slices = min(NUM_SLICES, total_blocks)
    bps = pl.cdiv(total_blocks, num_slices)
    chunk_rows = min(CHUNK_ROWS, block_rows)

    # Any grid step reaching past the true n elements (ragged last block, duplicated
    # excess step, or wrapper pad) requires the in-kernel mask; otherwise emit none.
    need_mask = (num_slices * bps * block_rows * LANE) != n

    kernel = _make_kernel(block_rows, chunk_rows, bps, need_mask,
                          n // LANE, n % LANE, hard_labels)

    x2 = x.reshape(rows, LANE)
    t2 = t.reshape(rows, LANE)

    def in_map(s, j):
        # Clamp so excess steps re-read a valid block; their contribution is masked to 0.
        return (jnp.minimum(s * bps + j, total_blocks - 1), 0)

    partials = pl.pallas_call(
        kernel,
        out_shape=jax.ShapeDtypeStruct((num_slices, 8, LANE), jnp.float32),
        grid_spec=pltpu.PrefetchScalarGridSpec(
            num_scalar_prefetch=0,
            grid=(num_slices, bps),
            in_specs=[
                pl.BlockSpec((block_rows, LANE), in_map),
                pl.BlockSpec((block_rows, LANE), in_map),
            ],
            out_specs=pl.BlockSpec((None, 8, LANE), lambda s, j: (s, 0, 0)),
        ),
        compiler_params=pltpu.CompilerParams(
            dimension_semantics=("parallel", "arbitrary"),
            vmem_limit_bytes=VMEM_LIMIT_BYTES,
        ),
        cost_estimate=pl.CostEstimate(
            flops=8 * n,
            transcendentals=(1 if hard_labels else 2) * n,
            bytes_accessed=x2.size * x2.dtype.itemsize
                           + t2.size * t2.dtype.itemsize
                           + num_slices * 8 * LANE * 4,
        ),
    )(x2, t2)

    # Tiny epilogue: reduce (num_slices, 8, 128) partials + scalar focal transform.
    bce = jnp.sum(partials) / jnp.float32(n)
    return alpha * (1.0 - jnp.exp(-bce)) ** gamma * bce


def _ref_focal(inputs, targets, alpha=0.8, gamma=2.0):
    log_x = jnp.maximum(jnp.log(inputs), -100.0)
    log_1mx = jnp.maximum(jnp.log(1.0 - inputs), -100.0)
    bce = jnp.mean(-(targets * log_x + (1.0 - targets) * log_1mx))
    return alpha * (1.0 - jnp.exp(-bce)) ** gamma * bce


if __name__ == "__main__":
    key = jax.random.PRNGKey(0)
    k_in, k_tgt, k_in2, k_tgt2 = jax.random.split(key, 4)

    # Primary check: lane-aligned case (no pad, no mask path).
    shape = (2, 4, 16, 16)
    inputs = jax.random.uniform(k_in, shape, dtype=jnp.float32,
                                minval=1e-4, maxval=1.0 - 1e-4)
    targets = (jax.random.uniform(k_tgt, shape) > 0.5).astype(jnp.float32)

    loss = jax.block_until_ready(focal_loss(inputs, targets))
    ref = _ref_focal(inputs, targets)
    assert jnp.allclose(loss, ref, rtol=1e-5, atol=1e-6), (loss, ref)

    # Secondary check: odd size exercising the padded/masked path.
    shape2 = (3, 5, 7)
    inputs2 = jax.random.uniform(k_in2, shape2, dtype=jnp.float32,
                                 minval=1e-4, maxval=1.0 - 1e-4)
    targets2 = (jax.random.uniform(k_tgt2, shape2) > 0.5).astype(jnp.float32)

    loss2 = jax.block_until_ready(focal_loss(inputs2, targets2))
    ref2 = _ref_focal(inputs2, targets2)
    assert jnp.allclose(loss2, ref2, rtol=1e-5, atol=1e-6), (loss2, ref2)

    print("KERNEL_OK")
</pallas_src>

<mosaic_0001>
module attributes {stable_mosaic.version = 11 : i64} {
  func.func @kernel(%arg0: i32, %arg1: i32, %arg2: memref<16x128xf32, #tpu.memory_space<vmem>>, %arg3: memref<16x128xf32, #tpu.memory_space<vmem>>, %arg4: memref<1x8x128xf32, #tpu.memory_space<vmem>>) attributes {dimension_semantics = [#tpu.dimension_semantics<parallel>, #tpu.dimension_semantics<arbitrary>], iteration_bounds = array<i64: 1, 1>, scalar_prefetch = 0 : i64, scratch_operands = 0 : i64, tpu.core_type = #tpu.core_type<tc>, window_params = [{transform_indices = @transform_0, window_bounds = array<i64: 16, 128>}, {transform_indices = @transform_1, window_bounds = array<i64: 16, 128>}, {transform_indices = @transform_2, window_bounds = array<i64: 1, 8, 128>}]} {
    %c0_i32 = arith.constant 0 : i32
    %0 = arith.cmpi eq, %arg1, %c0_i32 : i32
    %1 = arith.extui %0 : i1 to i32
    %c0_i32_0 = arith.constant 0 : i32
    %2 = arith.cmpi ne, %1, %c0_i32_0 : i32
    scf.if %2 {
      %cst_15 = arith.constant 0.000000e+00 : f32
      %34 = vector.broadcast %cst_15 : f32 to vector<8x128xf32>
      %c0_16 = arith.constant 0 : index
      %c0_17 = arith.constant 0 : index
      %c0_18 = arith.constant 0 : index
      %35 = vector.load %arg4[%c0_16, %c0_17, %c0_18] : memref<1x8x128xf32, #tpu.memory_space<vmem>>, vector<1x8x128xf32>
      %36 = vector.shape_cast %35 : vector<1x8x128xf32> to vector<8x128xf32>
      %37 = vector.shape_cast %34 : vector<8x128xf32> to vector<1x8x128xf32>
      tpu.vector_store %arg4[%c0_16, %c0_17, %c0_18], %37 {strides = array<i32>} : memref<1x8x128xf32, #tpu.memory_space<vmem>>, vector<1x8x128xf32>,
    } else {
    }
    %cst = arith.constant 0.000000e+00 : f32
    %3 = vector.broadcast %cst : f32 to vector<8x128xf32>
    %c0_i32_1 = arith.constant 0 : i32
    %c16_i32 = arith.constant 16 : i32
    %4 = arith.muli %c0_i32_1, %c16_i32 : i32
    %5 = tpu.assume_multiple %4, 16 : i32
    %6 = arith.index_cast %5 : i32 to index
    %c0 = arith.constant 0 : index
    %7 = vector.load %arg2[%6, %c0] : memref<16x128xf32, #tpu.memory_space<vmem>>, vector<16x128xf32>
    %8 = arith.index_cast %5 : i32 to index
    %c0_2 = arith.constant 0 : index
    %9 = vector.load %arg3[%8, %c0_2] : memref<16x128xf32, #tpu.memory_space<vmem>>, vector<16x128xf32>
    %10 = math.log %7 : vector<16x128xf32>
    %cst_3 = arith.constant -1.000000e+02 : f32
    %11 = vector.broadcast %cst_3 : f32 to vector<16x128xf32>
    %12 = arith.maximumf %10, %11 : vector<16x128xf32>
    %cst_4 = arith.constant 1.000000e+00 : f32
    %13 = vector.broadcast %cst_4 : f32 to vector<16x128xf32>
    %14 = arith.subf %13, %7 : vector<16x128xf32>
    %15 = math.log %14 : vector<16x128xf32>
    %cst_5 = arith.constant -1.000000e+02 : f32
    %16 = vector.broadcast %cst_5 : f32 to vector<16x128xf32>
    %17 = arith.maximumf %15, %16 : vector<16x128xf32>
    %18 = arith.mulf %9, %12 : vector<16x128xf32>
    %cst_6 = arith.constant 1.000000e+00 : f32
    %19 = vector.broadcast %cst_6 : f32 to vector<16x128xf32>
    %20 = arith.subf %19, %9 : vector<16x128xf32>
    %21 = arith.mulf %20, %17 : vector<16x128xf32>
    %22 = arith.addf %18, %21 : vector<16x128xf32>
    %cst_7 = arith.constant 0.000000e+00 : f32
    %23 = vector.broadcast %cst_7 : f32 to vector<16x128xf32>
    %24 = arith.subf %23, %22 : vector<16x128xf32>
    %25 = vector.shape_cast %24 : vector<16x128xf32> to vector<2x8x128xf32>
    %cst_8 = arith.constant dense<0.000000e+00> : vector<8x128xf32>
    %26 = vector.multi_reduction <add>, %25, %cst_8 [0] : vector<2x8x128xf32> to vector<8x128xf32>
    %27 = arith.addf %3, %26 : vector<8x128xf32>
    %c1_i32 = arith.constant 1 : i32
    %c0_9 = arith.constant 0 : index
    %c0_10 = arith.constant 0 : index
    %c0_11 = arith.constant 0 : index
    %28 = vector.load %arg4[%c0_9, %c0_10, %c0_11] : memref<1x8x128xf32, #tpu.memory_space<vmem>>, vector<1x8x128xf32>
    %29 = vector.shape_cast %28 : vector<1x8x128xf32> to vector<8x128xf32>
    %30 = arith.addf %29, %27 : vector<8x128xf32>
    %c0_12 = arith.constant 0 : index
    %c0_13 = arith.constant 0 : index
    %c0_14 = arith.constant 0 : index
    %31 = vector.load %arg4[%c0_12, %c0_13, %c0_14] : memref<1x8x128xf32, #tpu.memory_space<vmem>>, vector<1x8x128xf32>
    %32 = vector.shape_cast %31 : vector<1x8x128xf32> to vector<8x128xf32>
    %33 = vector.shape_cast %30 : vector<8x128xf32> to vector<1x8x128xf32>
    tpu.vector_store %arg4[%c0_12, %c0_13, %c0_14], %33 {strides = array<i32>} : memref<1x8x128xf32, #tpu.memory_space<vmem>>, vector<1x8x128xf32>,
    return
  }
  func.func @transform_0(%arg0: i32, %arg1: i32) -> (i32, i32) {
    %c1_i32 = arith.constant 1 : i32
    %0 = arith.muli %arg0, %c1_i32 : i32
    %1 = arith.addi %0, %arg1 : i32
    %c0_i32 = arith.constant 0 : i32
    %2 = arith.minsi %1, %c0_i32 : i32
    %c0_i32_0 = arith.constant 0 : i32
    %c0_i32_1 = arith.constant 0 : i32
    return %2, %c0_i32_0 : i32, i32
  }
  func.func @transform_1(%arg0: i32, %arg1: i32) -> (i32, i32) {
    %c1_i32 = arith.constant 1 : i32
    %0 = arith.muli %arg0, %c1_i32 : i32
    %1 = arith.addi %0, %arg1 : i32
    %c0_i32 = arith.constant 0 : i32
    %2 = arith.minsi %1, %c0_i32 : i32
    %c0_i32_0 = arith.constant 0 : i32
    %c0_i32_1 = arith.constant 0 : i32
    return %2, %c0_i32_0 : i32, i32
  }
  func.func @transform_2(%arg0: i32, %arg1: i32) -> (i32, i32, i32) {
    %c0_i32 = arith.constant 0 : i32
    %c0_i32_0 = arith.constant 0 : i32
    %c0_i32_1 = arith.constant 0 : i32
    return %arg0, %c0_i32, %c0_i32_0 : i32, i32, i32
  }
}

</mosaic_0001>

<bundles_post_ra>
// kernel: tpu_custom_call.1
= control target key start
LH: loop header
LB: loop body
LE: loop exit
PB: predicated region body
PF: predicated region fallthrough
CT: control target
= control target key end

     0   :  { %7 = vsyncpa [#allocation3], 0  ;;  %s260_s0 = inlined_call_operand.hbm [shape: f32[16,128], index: 0, kind: input, shape index: {}]   ;;  %s261_s1 = inlined_call_operand.hbm [shape: f32[16,128], index: 1, kind: input, shape index: {}]   ;;  %s262_s2 = inlined_call_operand.hbm [shape: f32[1,8,128], index: 2, kind: output, shape index: {}]  }
   0x1   :  { %8 = vsyncpa [#allocation6], 0 }
   0x2   :  { %9 = vsyncpa [#allocation4], 0  ;;  %s204_s9 = smov [#allocation2]   ;;  %s132_s13 = scalar_lea.hbm %s260_s0, 256 }
   0x3   :  { %s21_s10 = sshll.u32 %s204_s9, 4  ;;  %p133_p0 = scmp.ne.s32.totalorder %s260_s0, %s132_s13  ;;  %s22_s10 = int_to_ptr.vmem [resolvable:$true] %s21_s10 }
   0x4   :  { %p136_p1 = scmp.lt.u32.totalorder %s132_s13, %s260_s0 }
   0x6   :  { %p138_p2 = pnand %p136_p1, %p133_p0 }
   0x8   :  { %141 = shalt.err (!%p138_p2)
}
   0x9   :  { %s142_s18 = scalar_lea.vmem %s22_s10, 256  ;;  %p147_p4 = scmp.lt.s32.totalorder %s22_s10, %s22_s10 }
   0xa   :  { %p143_p3 = scmp.ne.s32.totalorder %s22_s10, %s142_s18  ;;  %p148_p5 = scmp.lt.s32.totalorder %s142_s18, %s142_s18 }
   0xc   :  { %p149_p6 = por %p148_p5, %p147_p4 }
   0xe   :  { %p150_p7 = pnand %p149_p6, %p143_p3 }
  0x10   :  { %153 = shalt.err (!%p150_p7)
}
  0x11   :  { %s205_s19 = smov 128   ;;  %s206_s20 = smov 8  }
  0x12   :  { %27 = dma.hbm_to_vmem [thread:$0]  %s260_s0, 256, %s22_s10, [#allocation3], %s205_s19, %s205_s19, %s206_s20  }
  0x13   :  { %s207_s23 = smov [#allocation5]   ;;  %s154_s27 = scalar_lea.hbm %s261_s1, 256 }
  0x14   :  { %s39_s24 = sshll.u32 %s207_s23, 4  ;;  %p155_p8 = scmp.ne.s32.totalorder %s261_s1, %s154_s27  ;;  %s40_s24 = int_to_ptr.vmem [resolvable:$true] %s39_s24 }
  0x15   :  { %p158_p9 = scmp.lt.u32.totalorder %s154_s27, %s261_s1 }
  0x17   :  { %p160_p10 = pnand %p158_p9, %p155_p8 }
  0x19   :  { %163 = shalt.err (!%p160_p10)
}
  0x1a   :  { %s164_s4 = scalar_lea.vmem %s40_s24, 256  ;;  %p169_p12 = scmp.lt.s32.totalorder %s40_s24, %s40_s24 }
  0x1b   :  { %p165_p11 = scmp.ne.s32.totalorder %s40_s24, %s164_s4  ;;  %p170_p13 = scmp.lt.s32.totalorder %s164_s4, %s164_s4 }
  0x1d   :  { %p171_p0 = por %p170_p13, %p169_p12 }
  0x1f   :  { %p172_p1 = pnand %p171_p0, %p165_p11 }
  0x21   :  { %175 = shalt.err (!%p172_p1)
}
  0x22   :  { %45 = dma.hbm_to_vmem [thread:$0]  %s261_s1, 256, %s40_s24, [#allocation6], %s205_s19, %s205_s19, %s206_s20  }
  0x23   :  { %198 = dma.done.wait [#allocation3], 256  }
  0x24   :  { %199 = vsyncadd [#allocation3], 4294967040 }
  0x25   :  { %200 = dma.done.wait [#allocation6], 256  }
  0x26   :  { %201 = vsyncadd [#allocation6], 4294967040  ;;  %v65_v0 = vld [vmem:[#allocation2] sm:$0xff]  ;;  %v66_v1 = vld [vmem:[#allocation2 + $0x8] sm:$0xff]  ;;  %s208_s1 = smov [#allocation7]  }
  0x27   :  { %124 = vlog2.f32 %v65_v0  ;;  %v75_v2 = vsub.f32 1.0, %v65_v0  ;;  %v76_v3 = vsub.f32 1.0, %v66_v1  ;;  %v67_v5 = vld [vmem:[#allocation5] sm:$0xff]  ;;  %v68_v7 = vld [vmem:[#allocation5 + $0x8] sm:$0xff]  ;;  %s104_s6 = sshll.u32 %s208_s1, 4  ;;  %s105_s6 = int_to_ptr.vmem [resolvable:$true] %s104_s6 }
  0x28   :  { %126 = vlog2.f32 %v66_v1  ;;  %v85_v14 = vsub.f32 1.0, %v67_v5  ;;  %v86_v17 = vsub.f32 1.0, %v68_v7  ;;  %s176_s7 = scalar_lea.vmem %s105_s6, 128  ;;  %p181_p3 = scmp.lt.s32.totalorder %s105_s6, %s105_s6 }
  0x29   :  { %128 = vlog2.f32 %v75_v2  ;;  %p177_p2 = scmp.ne.s32.totalorder %s105_s6, %s176_s7  ;;  %p182_p4 = scmp.lt.s32.totalorder %s176_s7, %s176_s7 }
  0x2a   :  { %130 = vlog2.f32 %v76_v3 }
  0x2b   :  { %p183_p5 = por %p182_p4, %p181_p3 }
  0x2d   :  { %p184_p6 = pnand %p183_p5, %p177_p2 }
  0x31   :  { %v125_v4 = vpop.eup %124 }
  0x32   :  { %v127_v6 = vpop.eup %126  ;;  %v70_v8 = vmul.f32 0.6931472, %v125_v4 }
  0x33   :  { %v129_v9 = vpop.eup %128  ;;  %v72_v10 = vmul.f32 0.6931472, %v127_v6 }
  0x34   :  { %v131_v11 = vpop.eup %130  ;;  %v73_v12 = vmax.f32 %v70_v8, -100.0  ;;  %v78_v13 = vmul.f32 0.6931472, %v129_v9 }
  0x35   :  { %v74_v15 = vmax.f32 %v72_v10, -100.0  ;;  %v80_v16 = vmul.f32 0.6931472, %v131_v11 }
  0x36   :  { %v81_v18 = vmax.f32 %v78_v13, -100.0  ;;  %v83_v19 = vmul.f32 %v73_v12, %v67_v5 }
  0x37   :  { %v82_v20 = vmax.f32 %v80_v16, -100.0  ;;  %v84_v21 = vmul.f32 %v74_v15, %v68_v7 }
  0x38   :  { %v87_v22 = vmul.f32 %v85_v14, %v81_v18 }
  0x39   :  { %v88_v23 = vmul.f32 %v86_v17, %v82_v20 }
  0x3a   :  { %v89_v24 = vadd.f32 %v87_v22, %v83_v19 }
  0x3b   :  { %v90_v25 = vadd.f32 %v88_v23, %v84_v21 }
  0x3c   :  { %v91_v26 = vsub.f32 0.0, %v89_v24 }
  0x3d   :  { %v92_v27 = vsub.f32 0.0, %v90_v25 }
  0x3f   :  { %v93_v28 = vadd.f32 %v92_v27, %v91_v26 }
  0x41   :  { %97 = vst [vmem:[#allocation7] sm:$0xff] %v93_v28 }
  0x42   :  { %187 = shalt.err (!%p184_p6)
}
  0x43   :  { %s188_s10 = scalar_lea.hbm %s262_s2, 128 }
  0x44   :  { %p189_p7 = scmp.ne.s32.totalorder %s262_s2, %s188_s10  ;;  %p192_p8 = scmp.lt.u32.totalorder %s188_s10, %s262_s2 }
  0x46   :  { %p194_p9 = pnand %p192_p8, %p189_p7 }
  0x48   :  { %197 = shalt.err (!%p194_p9)
}
  0x49   :  { %107 = dma.vmem_to_hbm [thread:$0]  %s105_s6, 128, %s262_s2, [#allocation4]  }
  0x4a   :  { %202 = dma.done.wait [#allocation4], 128  }
  0x4b   :  { %203 = vsyncadd [#allocation4], 4294967168 }
  0x4c   :  { %111 = vsyncpa [#allocation3], 1 }
  0x4d   :  { %112 = vsyncpa [#allocation6], 1 }
  0x4e   :  { %113 = vsyncpa [#allocation4], 1 }

</bundles_post_ra>
